<compile_context>
chip_gen: v7x
topology: tpu7x:2x2x1
jax: 0.10.0
libtpu: 0.0.40
codegen_flags: <defaults>
</compile_context>

<pallas_src>
import math
import functools

import jax
import jax.numpy as jnp
from jax.experimental import pallas as pl
from jax.experimental.pallas import tpu as pltpu


# ---------------------------------------------------------------------------
# Kernel A: fused Q/K/V projections (each token projected exactly once).
# ---------------------------------------------------------------------------
def _qkv_proj_kernel(src_ref, tar_ref,
                     wq_ref, wk_ref, wv_ref,
                     bq_ref, bk_ref, bv_ref,
                     q_ref, k_ref, v_ref,
                     *, scale):
    f32 = jnp.float32
    bf16 = jnp.bfloat16

    s = src_ref[0]          # (TS, D) bf16 -> keys / values source
    t = tar_ref[0]          # (TS, D) bf16 -> queries source

    # bf16 operands, fp32 accumulation on the MXU; bias add in fp32.
    q = (jnp.dot(t, wq_ref[...], preferred_element_type=f32) + bq_ref[...]) * scale
    k = jnp.dot(s, wk_ref[...], preferred_element_type=f32) + bk_ref[...]
    v = jnp.dot(s, wv_ref[...], preferred_element_type=f32) + bv_ref[...]

    q_ref[0] = q.astype(bf16)
    k_ref[0] = k.astype(bf16)
    v_ref[0] = v.astype(bf16)


# ---------------------------------------------------------------------------
# Kernel B: flash-style attention over a KV grid axis + residual / LN / FFN.
# ---------------------------------------------------------------------------
def _attn_ffn_kernel(q_ref, k_ref, v_ref, res_ref,
                     wo_ref, bo_ref,
                     g1_ref, beta1_ref,
                     w1_ref, b1_ref, w2_ref, b2_ref,
                     g2_ref, beta2_ref,
                     out_ref,
                     m_ref, l_ref, acc_ref,
                     *, nhead):
    f32 = jnp.float32
    bf16 = jnp.bfloat16

    kv = pl.program_id(2)
    TQ, D = q_ref.shape[1], q_ref.shape[2]
    TK = k_ref.shape[1]
    dh = D // nhead

    # ---- init running-softmax state at the first KV step ----
    @pl.when(kv == 0)
    def _():
        m_ref[...] = jnp.full(m_ref.shape, -jnp.inf, dtype=m_ref.dtype)
        l_ref[...] = jnp.zeros(l_ref.shape, dtype=l_ref.dtype)
        acc_ref[...] = jnp.zeros(acc_ref.shape, dtype=acc_ref.dtype)

    # Q was pre-scaled by 1/sqrt(dh) in the projection kernel; all bf16.
    qh = q_ref[0].reshape(TQ, nhead, dh)
    kh = k_ref[0].reshape(TK, nhead, dh)
    vh = v_ref[0].reshape(TK, nhead, dh)

    # scores for this KV chunk only: (H, TQ, TK) fp32
    s = jnp.einsum("qhd,khd->hqk", qh, kh, preferred_element_type=f32)

    m_prev = m_ref[...]                                        # (H, TQ, 1)
    m_new = jnp.maximum(m_prev, jnp.max(s, axis=-1, keepdims=True))
    alpha = jnp.exp(m_prev - m_new)                            # rescale factor
    p = jnp.exp(s - m_new)                                     # (H, TQ, TK)
    l_ref[...] = alpha * l_ref[...] + jnp.sum(p, axis=-1, keepdims=True)
    acc_ref[...] = alpha * acc_ref[...] + jnp.einsum(
        "hqk,khd->hqd", p.astype(bf16), vh, preferred_element_type=f32)
    m_ref[...] = m_new

    # ---- finalize on the last KV step: out-proj + LN1 + FFN + LN2 ----
    @pl.when(kv == pl.num_programs(2) - 1)
    def _():
        o = acc_ref[...] * pl.reciprocal(l_ref[...], approx=True)  # (H, TQ, dh)
        attn = jnp.swapaxes(o, 0, 1).reshape(TQ, D)                 # (TQ, D)
        attn = jnp.dot(attn.astype(bf16), wo_ref[...],
                       preferred_element_type=f32) + bo_ref[...]

        # residual (src) + LayerNorm1 in fp32
        x = res_ref[0] + attn
        mu = jnp.mean(x, axis=-1, keepdims=True)
        var = jnp.mean((x - mu) ** 2, axis=-1, keepdims=True)
        x = (x - mu) * jax.lax.rsqrt(var + 1e-5) * g1_ref[...] + beta1_ref[...]

        # FFN: Linear(D,4D) -> ReLU -> Linear(4D,D); ReLU output kept in bf16.
        h1 = jnp.maximum(
            jnp.dot(x.astype(bf16), w1_ref[...], preferred_element_type=f32)
            + b1_ref[...], 0.0).astype(bf16)
        ffn = jnp.dot(h1, w2_ref[...], preferred_element_type=f32) + b2_ref[...]

        # residual + LayerNorm2
        y = x + ffn
        mu2 = jnp.mean(y, axis=-1, keepdims=True)
        var2 = jnp.mean((y - mu2) ** 2, axis=-1, keepdims=True)
        y = (y - mu2) * jax.lax.rsqrt(var2 + 1e-5) * g2_ref[...] + beta2_ref[...]

        out_ref[0] = y.astype(out_ref.dtype)


# ---------------------------------------------------------------------------
# Wrapper
# ---------------------------------------------------------------------------
def _pick_tile(s, candidates):
    for c in candidates:
        if s >= c and s % c == 0:
            return c
    return s


def _vmem_limit_bytes():
    # Generation-aware limit: leave compiler-scratch headroom, especially on
    # v7x where physical VMEM is only 64 MiB.
    try:
        cap = int(pltpu.get_tpu_info().vmem_capacity_bytes)
        return min((cap * 3) // 4, 96 * 1024 * 1024)
    except Exception:
        return 64 * 1024 * 1024


def attention_layer_pallas(src, tar, params, *, nhead, tq=None, tk=None):
    """src, tar: (B, S, D) batch-first float32.  Returns (B, S, D) float32."""
    B, S, D = src.shape
    F = params["w1"].shape[1]              # 4 * D
    assert D % nhead == 0
    dh = D // nhead
    scale = 1.0 / math.sqrt(dh)

    bf16, f32 = jnp.bfloat16, jnp.float32

    # bf16 weights/activations for the MXU; accumulation stays fp32 in-kernel.
    wq = params["wq"].astype(bf16); wk = params["wk"].astype(bf16)
    wv = params["wv"].astype(bf16); wo = params["wo"].astype(bf16)
    w1 = params["w1"].astype(bf16); w2 = params["w2"].astype(bf16)
    bq = params["bq"].astype(f32); bk = params["bk"].astype(f32)
    bv = params["bv"].astype(f32); bo = params["bo"].astype(f32)
    b1 = params["b1"].astype(f32); b2 = params["b2"].astype(f32)
    g1, beta1 = params["ln1_g"].astype(f32), params["ln1_b"].astype(f32)
    g2, beta2 = params["ln2_g"].astype(f32), params["ln2_b"].astype(f32)

    src_b = src.astype(bf16)     # K/V input (halves HBM traffic)
    tar_b = tar.astype(bf16)     # Q input

    # Tile sizes: 256 query rows already fill the MXU M dimension.
    if tq is None:
        tq = _pick_tile(S, (256, 128))
    if tk is None:
        tk = _pick_tile(S, (512, 256, 128))
    assert S % tq == 0 and S % tk == 0
    n_q, n_kv = S // tq, S // tk

    vmem_limit = _vmem_limit_bytes()

    # ----------------------- Kernel A: Q/K/V projections ---------------------
    ts = _pick_tile(S, (512, 256, 128))
    n_s = S // ts

    def inv2(shape):
        # Grid-invariant weight block (DMA'd once, not re-fetched per step).
        # TODO(synk): pipeline_mode=pl.Buffered(1) here on v7x to halve weight VMEM.
        return pl.BlockSpec(shape, lambda b, s: (0, 0))

    tile2 = pl.BlockSpec((1, ts, D), lambda b, s: (b, s, 0))
    out2 = pl.BlockSpec((1, ts, D), lambda b, s: (b, s, 0))

    proj_flops = 2 * B * S * D * D * 3
    proj_bytes = 2 * B * S * D * 2 + 3 * D * D * 2 + 3 * D * 4 + 3 * B * S * D * 2

    q, k, v = pl.pallas_call(
        functools.partial(_qkv_proj_kernel, scale=scale),
        out_shape=(jax.ShapeDtypeStruct((B, S, D), bf16),
                   jax.ShapeDtypeStruct((B, S, D), bf16),
                   jax.ShapeDtypeStruct((B, S, D), bf16)),
        grid_spec=pltpu.PrefetchScalarGridSpec(
            num_scalar_prefetch=0,
            grid=(B, n_s),
            in_specs=[tile2, tile2,
                      inv2((D, D)), inv2((D, D)), inv2((D, D)),
                      inv2((1, D)), inv2((1, D)), inv2((1, D))],
            out_specs=[out2, out2, out2],
        ),
        compiler_params=pltpu.CompilerParams(
            dimension_semantics=("parallel", "parallel"),
            vmem_limit_bytes=vmem_limit,
        ),
        cost_estimate=pl.CostEstimate(
            flops=int(proj_flops), transcendentals=0,
            bytes_accessed=int(proj_bytes)),
    )(src_b, tar_b, wq, wk, wv, bq, bk, bv)

    # ------------------- Kernel B: attention + FFN + LayerNorms --------------
    def inv3(shape):
        # TODO(synk): pipeline_mode=pl.Buffered(1) on v7x; stream w1/w2 over an
        # F axis when D >= 1024 so FFN weights need not be fully VMEM-resident.
        return pl.BlockSpec(shape, lambda b, i, j: (0, 0))

    q_spec = pl.BlockSpec((1, tq, D), lambda b, i, j: (b, i, 0))
    res_spec = pl.BlockSpec((1, tq, D), lambda b, i, j: (b, i, 0))
    kv_spec = pl.BlockSpec((1, tk, D), lambda b, i, j: (b, j, 0))

    attn_flops = (4 * B * S * S * D          # QK^T + PV
                  + 2 * B * S * D * D        # output projection
                  + 4 * B * S * D * F)       # FFN (two matmuls)
    attn_trans = B * nhead * S * S + 2 * B * S * D
    attn_bytes = (B * S * D * 2              # q (resident across kv steps)
                  + 2 * n_q * B * S * D * 2  # k, v streamed per query tile
                  + 2 * B * S * D * 4        # residual in + output out (fp32)
                  + (D * D + 2 * D * F) * 2 + (6 * D + F) * 4)

    out = pl.pallas_call(
        functools.partial(_attn_ffn_kernel, nhead=nhead),
        out_shape=jax.ShapeDtypeStruct((B, S, D), src.dtype),
        grid_spec=pltpu.PrefetchScalarGridSpec(
            num_scalar_prefetch=0,
            grid=(B, n_q, n_kv),
            in_specs=[q_spec, kv_spec, kv_spec, res_spec,
                      inv3((D, D)), inv3((1, D)),          # wo, bo
                      inv3((1, D)), inv3((1, D)),          # ln1 gamma, beta
                      inv3((D, F)), inv3((1, F)),          # w1, b1
                      inv3((F, D)), inv3((1, D)),          # w2, b2
                      inv3((1, D)), inv3((1, D))],         # ln2 gamma, beta
            out_specs=pl.BlockSpec((1, tq, D), lambda b, i, j: (b, i, 0)),
            scratch_shapes=[
                pltpu.VMEM((nhead, tq, 1), jnp.float32),   # running max
                pltpu.VMEM((nhead, tq, 1), jnp.float32),   # running sum
                pltpu.VMEM((nhead, tq, dh), jnp.float32),  # context accumulator
            ],
        ),
        compiler_params=pltpu.CompilerParams(
            dimension_semantics=("parallel", "parallel", "arbitrary"),
            vmem_limit_bytes=vmem_limit,
        ),
        cost_estimate=pl.CostEstimate(
            flops=int(attn_flops), transcendentals=int(attn_trans),
            bytes_accessed=int(attn_bytes)),
    )(q, k, v, src, wo, bo, g1, beta1, w1, b1, w2, b2, g2, beta2)
    return out


# ---------------------------------------------------------------------------
# Pure-JAX fp32 reference (mirrors torch MultiheadAttention + FFN, eval mode)
# ---------------------------------------------------------------------------
def attention_layer_ref(src, tar, params, *, nhead):
    B, S, D = src.shape
    dh = D // nhead
    scale = 1.0 / math.sqrt(dh)

    q = tar @ params["wq"] + params["bq"]
    k = src @ params["wk"] + params["bk"]
    v = src @ params["wv"] + params["bv"]

    def split(x):  # (B,S,D) -> (B,H,S,dh)
        return x.reshape(B, S, nhead, dh).transpose(0, 2, 1, 3)

    qh, kh, vh = split(q), split(k), split(v)
    scores = jnp.einsum("bhqd,bhkd->bhqk", qh, kh) * scale
    p = jax.nn.softmax(scores, axis=-1)
    attn = jnp.einsum("bhqk,bhkd->bhqd", p, vh)
    attn = attn.transpose(0, 2, 1, 3).reshape(B, S, D)
    attn = attn @ params["wo"] + params["bo"]

    def layernorm(x, g, b):
        mu = jnp.mean(x, axis=-1, keepdims=True)
        var = jnp.mean((x - mu) ** 2, axis=-1, keepdims=True)
        return (x - mu) / jnp.sqrt(var + 1e-5) * g + b

    x = layernorm(src + attn, params["ln1_g"], params["ln1_b"])
    ffn = jnp.maximum(x @ params["w1"] + params["b1"], 0.0) @ params["w2"] + params["b2"]
    return layernorm(x + ffn, params["ln2_g"], params["ln2_b"])


def init_params(key, d_model):
    F = 4 * d_model
    ks = jax.random.split(key, 12)
    sc = 0.1
    return {
        "wq": jax.random.normal(ks[0], (d_model, d_model), jnp.float32) * sc,
        "wk": jax.random.normal(ks[1], (d_model, d_model), jnp.float32) * sc,
        "wv": jax.random.normal(ks[2], (d_model, d_model), jnp.float32) * sc,
        "bq": jax.random.normal(ks[3], (1, d_model), jnp.float32) * sc,
        "bk": jax.random.normal(ks[4], (1, d_model), jnp.float32) * sc,
        "bv": jax.random.normal(ks[5], (1, d_model), jnp.float32) * sc,
        "wo": jax.random.normal(ks[6], (d_model, d_model), jnp.float32) * sc,
        "bo": jax.random.normal(ks[7], (1, d_model), jnp.float32) * sc,
        "w1": jax.random.normal(ks[8], (d_model, F), jnp.float32) * sc,
        "b1": jax.random.normal(ks[9], (1, F), jnp.float32) * sc,
        "w2": jax.random.normal(ks[10], (F, d_model), jnp.float32) * sc,
        "b2": jax.random.normal(ks[11], (1, d_model), jnp.float32) * sc,
        "ln1_g": jnp.ones((1, d_model), jnp.float32),
        "ln1_b": jnp.zeros((1, d_model), jnp.float32),
        "ln2_g": jnp.ones((1, d_model), jnp.float32),
        "ln2_b": jnp.zeros((1, d_model), jnp.float32),
    }


if __name__ == "__main__":
    B, S, D, H = 2, 8, 32, 4   # batch, seq, d_model, nhead

    key = jax.random.PRNGKey(0)
    k_src, k_tar, k_par = jax.random.split(key, 3)
    src = jax.random.normal(k_src, (B, S, D), jnp.float32)
    tar = jax.random.normal(k_tar, (B, S, D), jnp.float32)
    params = init_params(k_par, D)

    out = attention_layer_pallas(src, tar, params, nhead=H)
    out = jax.block_until_ready(out)

    ref = attention_layer_ref(src, tar, params, nhead=H)
    assert out.shape == (B, S, D)
    assert bool(jnp.all(jnp.isfinite(out)))
    # bf16 matmuls + online softmax + approx reciprocal vs fp32 reference.
    assert bool(jnp.allclose(out, ref, rtol=5e-2, atol=5e-2)), (
        "mismatch vs JAX reference; max abs diff = "
        f"{float(jnp.max(jnp.abs(out - ref)))}")

    print("KERNEL_OK")
</pallas_src>

<mosaic_0001>
module attributes {stable_mosaic.version = 11 : i64} {
  func.func @_qkv_proj_kernel(%arg0: i32, %arg1: i32, %arg2: memref<1x8x32xbf16, #tpu.memory_space<vmem>>, %arg3: memref<1x8x32xbf16, #tpu.memory_space<vmem>>, %arg4: memref<32x32xbf16, #tpu.memory_space<vmem>>, %arg5: memref<32x32xbf16, #tpu.memory_space<vmem>>, %arg6: memref<32x32xbf16, #tpu.memory_space<vmem>>, %arg7: memref<1x32xf32, #tpu.memory_space<vmem>>, %arg8: memref<1x32xf32, #tpu.memory_space<vmem>>, %arg9: memref<1x32xf32, #tpu.memory_space<vmem>>, %arg10: memref<1x8x32xbf16, #tpu.memory_space<vmem>>, %arg11: memref<1x8x32xbf16, #tpu.memory_space<vmem>>, %arg12: memref<1x8x32xbf16, #tpu.memory_space<vmem>>) attributes {dimension_semantics = [#tpu.dimension_semantics<parallel>, #tpu.dimension_semantics<parallel>], iteration_bounds = array<i64: 2, 1>, scalar_prefetch = 0 : i64, scratch_operands = 0 : i64, tpu.core_type = #tpu.core_type<tc>, window_params = [{transform_indices = @transform_0, window_bounds = array<i64: 1, 8, 32>}, {transform_indices = @transform_1, window_bounds = array<i64: 1, 8, 32>}, {pipeline_mode = #tpu.pipeline_mode<synchronous>, transform_indices = @transform_2, window_bounds = array<i64: 32, 32>}, {pipeline_mode = #tpu.pipeline_mode<synchronous>, transform_indices = @transform_3, window_bounds = array<i64: 32, 32>}, {pipeline_mode = #tpu.pipeline_mode<synchronous>, transform_indices = @transform_4, window_bounds = array<i64: 32, 32>}, {pipeline_mode = #tpu.pipeline_mode<synchronous>, transform_indices = @transform_5, window_bounds = array<i64: 1, 32>}, {pipeline_mode = #tpu.pipeline_mode<synchronous>, transform_indices = @transform_6, window_bounds = array<i64: 1, 32>}, {pipeline_mode = #tpu.pipeline_mode<synchronous>, transform_indices = @transform_7, window_bounds = array<i64: 1, 32>}, {transform_indices = @transform_8, window_bounds = array<i64: 1, 8, 32>}, {transform_indices = @transform_9, window_bounds = array<i64: 1, 8, 32>}, {transform_indices = @transform_10, window_bounds = array<i64: 1, 8, 32>}]} {
    %c0 = arith.constant 0 : index
    %c0_0 = arith.constant 0 : index
    %c0_1 = arith.constant 0 : index
    %0 = vector.load %arg2[%c0, %c0_0, %c0_1] : memref<1x8x32xbf16, #tpu.memory_space<vmem>>, vector<1x8x32xbf16>
    %1 = vector.shape_cast %0 : vector<1x8x32xbf16> to vector<8x32xbf16>
    %c0_2 = arith.constant 0 : index
    %c0_3 = arith.constant 0 : index
    %c0_4 = arith.constant 0 : index
    %2 = vector.load %arg3[%c0_2, %c0_3, %c0_4] : memref<1x8x32xbf16, #tpu.memory_space<vmem>>, vector<1x8x32xbf16>
    %3 = vector.shape_cast %2 : vector<1x8x32xbf16> to vector<8x32xbf16>
    %c0_5 = arith.constant 0 : index
    %c0_6 = arith.constant 0 : index
    %4 = vector.load %arg4[%c0_5, %c0_6] : memref<32x32xbf16, #tpu.memory_space<vmem>>, vector<32x32xbf16>
    %cst = arith.constant dense<0.000000e+00> : vector<8x32xf32>
    %5 = tpu.matmul %3, %4, %cst {dimension_numbers = #tpu.dot_dimension_numbers<[1], [0], [0], [1], [0, 0, 1, 1], [], []>} : vector<8x32xbf16>, vector<32x32xbf16>, vector<8x32xf32> -> vector<8x32xf32>
    %c0_7 = arith.constant 0 : index
    %c0_8 = arith.constant 0 : index
    %6 = vector.load %arg7[%c0_7, %c0_8] : memref<1x32xf32, #tpu.memory_space<vmem>>, vector<1x32xf32>
    %7 = vector.broadcast %6 : vector<1x32xf32> to vector<8x32xf32>
    %8 = arith.addf %5, %7 : vector<8x32xf32>
    %cst_9 = arith.constant 0.353553385 : f32
    %9 = vector.broadcast %cst_9 : f32 to vector<8x32xf32>
    %10 = arith.mulf %8, %9 : vector<8x32xf32>
    %c0_10 = arith.constant 0 : index
    %c0_11 = arith.constant 0 : index
    %11 = vector.load %arg5[%c0_10, %c0_11] : memref<32x32xbf16, #tpu.memory_space<vmem>>, vector<32x32xbf16>
    %cst_12 = arith.constant dense<0.000000e+00> : vector<8x32xf32>
    %12 = tpu.matmul %1, %11, %cst_12 {dimension_numbers = #tpu.dot_dimension_numbers<[1], [0], [0], [1], [0, 0, 1, 1], [], []>} : vector<8x32xbf16>, vector<32x32xbf16>, vector<8x32xf32> -> vector<8x32xf32>
    %c0_13 = arith.constant 0 : index
    %c0_14 = arith.constant 0 : index
    %13 = vector.load %arg8[%c0_13, %c0_14] : memref<1x32xf32, #tpu.memory_space<vmem>>, vector<1x32xf32>
    %14 = vector.broadcast %13 : vector<1x32xf32> to vector<8x32xf32>
    %15 = arith.addf %12, %14 : vector<8x32xf32>
    %c0_15 = arith.constant 0 : index
    %c0_16 = arith.constant 0 : index
    %16 = vector.load %arg6[%c0_15, %c0_16] : memref<32x32xbf16, #tpu.memory_space<vmem>>, vector<32x32xbf16>
    %cst_17 = arith.constant dense<0.000000e+00> : vector<8x32xf32>
    %17 = tpu.matmul %1, %16, %cst_17 {dimension_numbers = #tpu.dot_dimension_numbers<[1], [0], [0], [1], [0, 0, 1, 1], [], []>} : vector<8x32xbf16>, vector<32x32xbf16>, vector<8x32xf32> -> vector<8x32xf32>
    %c0_18 = arith.constant 0 : index
    %c0_19 = arith.constant 0 : index
    %18 = vector.load %arg9[%c0_18, %c0_19] : memref<1x32xf32, #tpu.memory_space<vmem>>, vector<1x32xf32>
    %19 = vector.broadcast %18 : vector<1x32xf32> to vector<8x32xf32>
    %20 = arith.addf %17, %19 : vector<8x32xf32>
    %21 = arith.truncf %10 : vector<8x32xf32> to vector<8x32xbf16>
    %c0_20 = arith.constant 0 : index
    %c0_21 = arith.constant 0 : index
    %c0_22 = arith.constant 0 : index
    %22 = vector.load %arg10[%c0_20, %c0_21, %c0_22] : memref<1x8x32xbf16, #tpu.memory_space<vmem>>, vector<1x8x32xbf16>
    %23 = vector.shape_cast %22 : vector<1x8x32xbf16> to vector<8x32xbf16>
    %24 = vector.shape_cast %21 : vector<8x32xbf16> to vector<1x8x32xbf16>
    tpu.vector_store %arg10[%c0_20, %c0_21, %c0_22], %24 {strides = array<i32>} : memref<1x8x32xbf16, #tpu.memory_space<vmem>>, vector<1x8x32xbf16>,
    %25 = arith.truncf %15 : vector<8x32xf32> to vector<8x32xbf16>
    %c0_23 = arith.constant 0 : index
    %c0_24 = arith.constant 0 : index
    %c0_25 = arith.constant 0 : index
    %26 = vector.load %arg11[%c0_23, %c0_24, %c0_25] : memref<1x8x32xbf16, #tpu.memory_space<vmem>>, vector<1x8x32xbf16>
    %27 = vector.shape_cast %26 : vector<1x8x32xbf16> to vector<8x32xbf16>
    %28 = vector.shape_cast %25 : vector<8x32xbf16> to vector<1x8x32xbf16>
    tpu.vector_store %arg11[%c0_23, %c0_24, %c0_25], %28 {strides = array<i32>} : memref<1x8x32xbf16, #tpu.memory_space<vmem>>, vector<1x8x32xbf16>,
    %29 = arith.truncf %20 : vector<8x32xf32> to vector<8x32xbf16>
    %c0_26 = arith.constant 0 : index
    %c0_27 = arith.constant 0 : index
    %c0_28 = arith.constant 0 : index
    %30 = vector.load %arg12[%c0_26, %c0_27, %c0_28] : memref<1x8x32xbf16, #tpu.memory_space<vmem>>, vector<1x8x32xbf16>
    %31 = vector.shape_cast %30 : vector<1x8x32xbf16> to vector<8x32xbf16>
    %32 = vector.shape_cast %29 : vector<8x32xbf16> to vector<1x8x32xbf16>
    tpu.vector_store %arg12[%c0_26, %c0_27, %c0_28], %32 {strides = array<i32>} : memref<1x8x32xbf16, #tpu.memory_space<vmem>>, vector<1x8x32xbf16>,
    return
  }
  func.func @transform_0(%arg0: i32, %arg1: i32) -> (i32, i32, i32) {
    %c0_i32 = arith.constant 0 : i32
    %c0_i32_0 = arith.constant 0 : i32
    return %arg0, %arg1, %c0_i32 : i32, i32, i32
  }
  func.func @transform_1(%arg0: i32, %arg1: i32) -> (i32, i32, i32) {
    %c0_i32 = arith.constant 0 : i32
    %c0_i32_0 = arith.constant 0 : i32
    return %arg0, %arg1, %c0_i32 : i32, i32, i32
  }
  func.func @transform_2(%arg0: i32, %arg1: i32) -> (i32, i32) {
    %c0_i32 = arith.constant 0 : i32
    %c0_i32_0 = arith.constant 0 : i32
    %c0_i32_1 = arith.constant 0 : i32
    return %c0_i32, %c0_i32_0 : i32, i32
  }
  func.func @transform_3(%arg0: i32, %arg1: i32) -> (i32, i32) {
    %c0_i32 = arith.constant 0 : i32
    %c0_i32_0 = arith.constant 0 : i32
    %c0_i32_1 = arith.constant 0 : i32
    return %c0_i32, %c0_i32_0 : i32, i32
  }
  func.func @transform_4(%arg0: i32, %arg1: i32) -> (i32, i32) {
    %c0_i32 = arith.constant 0 : i32
    %c0_i32_0 = arith.constant 0 : i32
    %c0_i32_1 = arith.constant 0 : i32
    return %c0_i32, %c0_i32_0 : i32, i32
  }
  func.func @transform_5(%arg0: i32, %arg1: i32) -> (i32, i32) {
    %c0_i32 = arith.constant 0 : i32
    %c0_i32_0 = arith.constant 0 : i32
    %c0_i32_1 = arith.constant 0 : i32
    return %c0_i32, %c0_i32_0 : i32, i32
  }
  func.func @transform_6(%arg0: i32, %arg1: i32) -> (i32, i32) {
    %c0_i32 = arith.constant 0 : i32
    %c0_i32_0 = arith.constant 0 : i32
    %c0_i32_1 = arith.constant 0 : i32
    return %c0_i32, %c0_i32_0 : i32, i32
  }
  func.func @transform_7(%arg0: i32, %arg1: i32) -> (i32, i32) {
    %c0_i32 = arith.constant 0 : i32
    %c0_i32_0 = arith.constant 0 : i32
    %c0_i32_1 = arith.constant 0 : i32
    return %c0_i32, %c0_i32_0 : i32, i32
  }
  func.func @transform_8(%arg0: i32, %arg1: i32) -> (i32, i32, i32) {
    %c0_i32 = arith.constant 0 : i32
    %c0_i32_0 = arith.constant 0 : i32
    return %arg0, %arg1, %c0_i32 : i32, i32, i32
  }
  func.func @transform_9(%arg0: i32, %arg1: i32) -> (i32, i32, i32) {
    %c0_i32 = arith.constant 0 : i32
    %c0_i32_0 = arith.constant 0 : i32
    return %arg0, %arg1, %c0_i32 : i32, i32, i32
  }
  func.func @transform_10(%arg0: i32, %arg1: i32) -> (i32, i32, i32) {
    %c0_i32 = arith.constant 0 : i32
    %c0_i32_0 = arith.constant 0 : i32
    return %arg0, %arg1, %c0_i32 : i32, i32, i32
  }
}

</mosaic_0001>

<bundles_post_ra>
// kernel: tpu_custom_call.1
= control target key start
LH: loop header
LB: loop body
LE: loop exit
PB: predicated region body
PF: predicated region fallthrough
CT: control target
= control target key end

     0   :  { %s2175_s0 = inlined_call_operand.hbm [shape: bf16[2,8,32], index: 0, kind: input, shape index: {}]   ;;  %s2176_s1 = inlined_call_operand.hbm [shape: bf16[2,8,32], index: 1, kind: input, shape index: {}]   ;;  %s2177_s2 = inlined_call_operand.hbm [shape: bf16[32,32], index: 2, kind: input, shape index: {}]   ;;  %s2178_s3 = inlined_call_operand.hbm [shape: bf16[32,32], index: 3, kind: input, shape index: {}]   ;;  %s2179_s4 = inlined_call_operand.hbm [shape: bf16[32,32], index: 4, kind: input, shape index: {}]   ;;  %s2180_s5 = inlined_call_operand.hbm [shape: f32[1,32], index: 5, kind: input, shape index: {}]   ;;  %s2181_s6 = inlined_call_operand.hbm [shape: f32[1,32], index: 6, kind: input, shape index: {}]   ;;  %s2182_s7 = inlined_call_operand.hbm [shape: f32[1,32], index: 7, kind: input, shape index: {}]   ;;  %s2183_s8 = inlined_call_operand.hbm [shape: bf16[2,8,32], index: 8, kind: output, shape index: {0}]   ;;  %s2184_s9 = inlined_call_operand.hbm [shape: bf16[2,8,32], index: 9, kind: output, shape index: {1}]   ;;  %s2185_s10 = inlined_call_operand.hbm [shape: bf16[2,8,32], index: 10, kind: output, shape index: {2}]  }
   0x1   :  { %2195 = sst [smem:[#allocation29_spill]] %s2175_s0 }
   0x2   :  { %2196 = sst [smem:[#allocation30_spill]] %s2177_s2 }
   0x3   :  { %2197 = sst [smem:[#allocation31_spill]] %s2178_s3 }
   0x4   :  { %2198 = sst [smem:[#allocation32_spill]] %s2179_s4 }
   0x5   :  { %2199 = sst [smem:[#allocation33_spill]] %s2180_s5 }
   0x6   :  { %2200 = sst [smem:[#allocation34_spill]] %s2181_s6 }
   0x7   :  { %2201 = sst [smem:[#allocation35_spill]] %s2183_s8 }
   0x8   :  { %2202 = sst [smem:[#allocation36_spill]] %s2184_s9 }
   0x9   :  { %2203 = sst [smem:[#allocation37_spill]] %s2185_s10 }
   0xa   :  { %16 = vsyncpa [#allocation3], 0 }
   0xb   :  { %18 = vsyncpa [#allocation3 + $0x1], 0 }
   0xc   :  { %19 = vsyncpa [#allocation6], 0 }
   0xd   :  { %21 = vsyncpa [#allocation6 + $0x1], 0 }
   0xe   :  { %22 = vsyncpa [#allocation9], 0 }
   0xf   :  { %23 = vsyncpa [#allocation12], 0 }
  0x10   :  { %24 = vsyncpa [#allocation15], 0 }
  0x11   :  { %25 = vsyncpa [#allocation4], 0 }
  0x12   :  { %27 = vsyncpa [#allocation4 + $0x1], 0 }
  0x13   :  { %28 = vsyncpa [#allocation18], 0 }
  0x14   :  { %30 = vsyncpa [#allocation18 + $0x1], 0  ;;  %s1708_s13 = smov 0   ;;  %s1710_s14 = smov 0  }
  0x15   :  { %s1712_s15 = smov 0   ;;  %s1714_s16 = smov 0  }
  0x16   :  { %s1716_s17 = smov 0   ;;  %s1718_s18 = smov 0  }
  0x17 LB: > { %2204 = sst [smem:[#allocation28_spill]] %s1628_s16  ;;  %s1739_s19 = sadd.s32 4294967295, %s1636_s18   ;;  %s1636_s18 = sphi %s1718_s18, %s36_s18   ;;  %s1632_s17 = sphi %s1716_s17, %s2244_s17   ;;  %s1628_s16 = sphi %s1714_s16, %s2243_s16   ;;  %s1624_s15 = sphi %s1712_s15, %s2242_s15   ;;  %s1620_s14 = sphi %s1710_s14, %s2241_s14   ;;  %s1616_s13 = sphi %s1708_s13, %s2240_s13  }
  0x18   : > { %p1021_p0 = scmp.ge.s32.totalorder %s1636_s18, 1  ;;  %p2189_p1 = scmp.eq.s32.totalorder %s1739_s19, 0 }
  0x19   : > { %p319_p2 = scmp.lt.s32.totalorder %s1636_s18, 3  ;;  %s1638_s21 = smov [#allocation7]  }
  0x1a   : > { %s331_s22 = sshll.u32 %s1638_s21, 4  ;;  %s1639_s24 = smov [#allocation8]   ;;  %s1748_s22 = int_to_ptr.vmem [resolvable:$true] %s331_s22 }
  0x1b   : > { %p1744_p3 = pnand %p1021_p0, %p319_p2  ;;  %s344_s25 = sshll.u32 %s1639_s24, 4  ;;  %s1759_s25 = int_to_ptr.vmem [resolvable:$true] %s344_s25 }
  0x1c   : > { %s1640_s26 = smov [#allocation11]   ;;  %s2207_s2 = sld [smem:[#allocation30_spill]] }
  0x1d   : > { %s2205_s20 = scalar_select %p1744_p3, 1, 0 }
  0x1e   : > { %p1132_p4 = pneg %p1744_p3  ;;  %s1761_s27 = sshll.u32 %s1640_s26, 4  ;;  %s372_s27 = int_to_ptr.vmem [resolvable:$true] %s1761_s27 }
  0x20   : > { %p1755_p6 = pnand %p1132_p4, %p2189_p1 }
  0x22   : > { %s1246_s30 = scalar_lea.hbm %s2207_s2, 256  ;;  %p1771_p8 = pneg %p1755_p6 }
  0x23   : > { %p1247_p7 = scmp.ne.s32.totalorder %s2207_s2, %s1246_s30  ;;  %p1253_p11 = scmp.lt.u32.totalorder %s1246_s30, %s2207_s2 }
  0x25   : > { %p1249_p9 = pnand %p1771_p8, %p1247_p7 }
  0x27   : > { %p1250_p10 = pneg %p1249_p9 }
  0x29   : > { %p1255_p12 = pnand %p1253_p11, %p1250_p10 }
  0x2b   : > { %1258 = shalt.err (!%p1255_p12)
}
  0x2c   : > { %s1259_s28 = scalar_lea.vmem %s1748_s22, 256  ;;  %p1267_p4 = scmp.lt.s32.totalorder %s1748_s22, %s1748_s22 }
  0x2d   : > { %p1260_p13 = scmp.ne.s32.totalorder %s1748_s22, %s1259_s28  ;;  %p1268_p5 = scmp.lt.s32.totalorder %s1259_s28, %s1259_s28 }
  0x2f   : > { %p1262_p0 = pnand %p1260_p13, %p1771_p8  ;;  %p1269_p7 = por %p1268_p5, %p1267_p4 }
  0x31   : > { %p1263_p2 = pneg %p1262_p0 }
  0x33   : > { %p1270_p9 = pnand %p1269_p7, %p1263_p2 }
  0x35   : > { %1273 = shalt.err (!%p1270_p9)
}
  0x36   : > { %s2191_s29 = smov 64   ;;  %s1642_s30 = smov 4  }
  0x37   : > { %1135 = dma.hbm_to_vmem [thread:$0]  (!%p1755_p6), %s2207_s2, 256, %s1748_s22, [#allocation6], %s2191_s29, %s2191_s29, %s1642_s30  }
  0x38   : > { %s2209_s3 = sld [smem:[#allocation31_spill]] }
  0x3e   : > { %s1274_s28 = scalar_lea.hbm %s2209_s3, 256 }
  0x3f   : > { %p1275_p5 = scmp.ne.s32.totalorder %s2209_s3, %s1274_s28  ;;  %p1281_p12 = scmp.lt.u32.totalorder %s1274_s28, %s2209_s3 }
  0x41   : > { %p1277_p10 = pnand %p1275_p5, %p1771_p8 }
  0x43   : > { %p1278_p11 = pneg %p1277_p10 }
  0x45   : > { %p1283_p13 = pnand %p1281_p12, %p1278_p11 }
  0x47   : > { %1286 = shalt.err (!%p1283_p13)
}
  0x48   : > { %s1287_s22 = scalar_lea.vmem %s1759_s25, 256  ;;  %p1295_p7 = scmp.lt.s32.totalorder %s1759_s25, %s1759_s25 }
  0x49   : > { %p1288_p0 = scmp.ne.s32.totalorder %s1759_s25, %s1287_s22  ;;  %p1296_p9 = scmp.lt.s32.totalorder %s1287_s22, %s1287_s22 }
  0x4b   : > { %p1290_p2 = pnand %p1288_p0, %p1771_p8  ;;  %p1297_p5 = por %p1296_p9, %p1295_p7 }
  0x4d   : > { %p1291_p4 = pneg %p1290_p2 }
  0x4f   : > { %p1298_p10 = pnand %p1297_p5, %p1291_p4 }
  0x51   : > { %1301 = shalt.err (!%p1298_p10)
}
  0x52   : > { %1138 = dma.hbm_to_vmem [thread:$0]  (!%p1755_p6), %s2209_s3, 256, %s1759_s25, [#allocation9], %s2191_s29, %s2191_s29, %s1642_s30  }
  0x53   : > { %s2210_s5 = sld [smem:[#allocation33_spill]] }
  0x59   : > { %s1302_s11 = scalar_lea.hbm %s2210_s5, 16 }
  0x5a   : > { %p1303_p11 = scmp.ne.s32.totalorder %s2210_s5, %s1302_s11  ;;  %p1309_p0 = scmp.lt.u32.totalorder %s1302_s11, %s2210_s5 }
  0x5c   : > { %p1305_p12 = pnand %p1303_p11, %p1771_p8 }
  0x5e   : > { %p1306_p13 = pneg %p1305_p12 }
  0x60   : > { %p1311_p2 = pnand %p1309_p0, %p1306_p13 }
  0x62   : > { %1314 = shalt.err (!%p1311_p2)
}
  0x63   : > { %s1315_s22 = scalar_lea.vmem %s372_s27, 16  ;;  %s1322_s25 = scalar_lea.vmem %s372_s27, 32 }
  0x64   : > { %p1316_p4 = scmp.ne.s32.totalorder %s372_s27, %s1315_s22  ;;  %p1323_p5 = scmp.lt.s32.totalorder %s372_s27, %s372_s27 }
  0x65   : > { %p1324_p10 = scmp.lt.s32.totalorder %s1322_s25, %s1315_s22 }
  0x66   : > { %p1318_p7 = pnand %p1316_p4, %p1771_p8 }
  0x67   : > { %p1325_p1 = por %p1324_p10, %p1323_p5 }
  0x68   : > { %p1319_p9 = pneg %p1318_p7 }
  0x6a   : > { %p1326_p3 = pnand %p1325_p1, %p1319_p9 }
  0x6c   : > { %1329 = shalt.err (!%p1326_p3)
}
  0x6d   : > { %1144 = dma.hbm_to_vmem [thread:$0]  (!%p1755_p6), %s2210_s5, 16, %s372_s27, [#allocation12]  }
  0x6e   : > { %s1643_s10 = smov [#allocation10]   ;;  %s1644_s11 = smov [#allocation13]  }
  0x6f   : > { %s357_s16 = sshll.u32 %s1643_s10, 4  ;;  %s382_s12 = sshll.u32 %s1644_s11, 4  ;;  %s358_s16 = int_to_ptr.vmem [resolvable:$true] %s357_s16  ;;  %s383_s12 = int_to_ptr.vmem [resolvable:$true] %s382_s12 }
  0x70   : > { %s2211_s4 = sld [smem:[#allocation32_spill]] }
  0x76   : > { %s1330_s28 = scalar_lea.hbm %s2211_s4, 256 }
  0x77   : > { %p1331_p1 = scmp.ne.s32.totalorder %s2211_s4, %s1330_s28  ;;  %p1337_p12 = scmp.lt.u32.totalorder %s1330_s28, %s2211_s4 }
  0x79   : > { %p1333_p3 = pnand %p1331_p1, %p1771_p8 }
  0x7b   : > { %p1334_p11 = pneg %p1333_p3 }
  0x7d   : > { %p1339_p13 = pnand %p1337_p12, %p1334_p11 }
  0x7f   : > { %1342 = shalt.err (!%p1339_p13)
}
  0x80   : > { %s1343_s27 = scalar_lea.vmem %s358_s16, 256  ;;  %p1351_p7 = scmp.lt.s32.totalorder %s358_s16, %s358_s16 }
  0x81   : > { %p1344_p0 = scmp.ne.s32.totalorder %s358_s16, %s1343_s27  ;;  %p1352_p9 = scmp.lt.s32.totalorder %s1343_s27, %s1343_s27 }
  0x83   : > { %p1346_p2 = pnand %p1344_p0, %p1771_p8  ;;  %p1353_p5 = por %p1352_p9, %p1351_p7 }
  0x85   : > { %p1347_p4 = pneg %p1346_p2 }
  0x87   : > { %p1354_p10 = pnand %p1353_p5, %p1347_p4 }
  0x89   : > { %1357 = shalt.err (!%p1354_p10)
}
  0x8a   : > { %s2212_s9 = smov 64   ;;  %s2213_s6 = sld [smem:[#allocation34_spill]] }
  0x8b   : > { %1141 = dma.hbm_to_vmem [thread:$0]  (!%p1755_p6), %s2211_s4, 256, %s358_s16, [#allocation9], %s2212_s9, %s2212_s9, %s1642_s30  }
  0x90   : > { %s1358_s26 = scalar_lea.hbm %s2213_s6, 16 }
  0x91   : > { %p1359_p1 = scmp.ne.s32.totalorder %s2213_s6, %s1358_s26  ;;  %p1365_p12 = scmp.lt.u32.totalorder %s1358_s26, %s2213_s6 }
  0x93   : > { %p1361_p3 = pnand %p1359_p1, %p1771_p8 }
  0x95   : > { %p1362_p11 = pneg %p1361_p3 }
  0x97   : > { %p1367_p13 = pnand %p1365_p12, %p1362_p11 }
  0x99   : > { %1370 = shalt.err (!%p1367_p13)
}
  0x9a   : > { %s1371_s27 = scalar_lea.vmem %s383_s12, 16  ;;  %s1378_s30 = scalar_lea.vmem %s383_s12, 32 }
  0x9b   : > { %p1372_p0 = scmp.ne.s32.totalorder %s383_s12, %s1371_s27  ;;  %p1379_p7 = scmp.lt.s32.totalorder %s383_s12, %s383_s12 }
  0x9c   : > { %p1380_p9 = scmp.lt.s32.totalorder %s1378_s30, %s1371_s27 }
  0x9d   : > { %p1374_p2 = pnand %p1372_p0, %p1771_p8 }
  0x9e   : > { %p1381_p5 = por %p1380_p9, %p1379_p7 }
  0x9f   : > { %p1375_p4 = pneg %p1374_p2 }
  0xa1   : > { %p1382_p10 = pnand %p1381_p5, %p1375_p4 }
  0xa3   : > { %1385 = shalt.err (!%p1382_p10)
}
  0xa4   : > { %1147 = dma.hbm_to_vmem [thread:$0]  (!%p1755_p6), %s2213_s6, 16, %s383_s12, [#allocation12]  }
  0xa5   : > { %s1645_s29 = smov [#allocation14]   ;;  %s1386_s26 = scalar_lea.hbm %s2182_s7, 16 }
  0xa6   : > { %s393_s10 = sshll.u32 %s1645_s29, 4  ;;  %p1387_p1 = scmp.ne.s32.totalorder %s2182_s7, %s1386_s26  ;;  %s394_s10 = int_to_ptr.vmem [resolvable:$true] %s393_s10 }
  0xa7   : > { %p1393_p12 = scmp.lt.u32.totalorder %s1386_s26, %s2182_s7 }
  0xa8   : > { %p1389_p3 = pnand %p1387_p1, %p1771_p8 }
  0xaa   : > { %p1390_p11 = pneg %p1389_p3 }
  0xac   : > { %p1395_p13 = pnand %p1393_p12, %p1390_p11 }
  0xae   : > { %1398 = shalt.err (!%p1395_p13)
}
  0xaf   : > { %s1399_s12 = scalar_lea.vmem %s394_s10, 16  ;;  %s1406_s27 = scalar_lea.vmem %s394_s10, 32 }
  0xb0   : > { %p1400_p0 = scmp.ne.s32.totalorder %s394_s10, %s1399_s12  ;;  %p1407_p7 = scmp.lt.s32.totalorder %s394_s10, %s394_s10 }
  0xb1   : > { %p1408_p9 = scmp.lt.s32.totalorder %s1406_s27, %s1399_s12 }
  0xb2   : > { %p1402_p2 = pnand %p1400_p0, %p1771_p8 }
  0xb3   : > { %p1409_p5 = por %p1408_p9, %p1407_p7 }
  0xb4   : > { %p1403_p4 = pneg %p1402_p2 }
  0xb6   : > { %p1410_p10 = pnand %p1409_p5, %p1403_p4 }
  0xb8   : > { %1413 = shalt.err (!%p1410_p10)
}
  0xb9   : > { %1150 = dma.hbm_to_vmem [thread:$0]  (!%p1755_p6), %s2182_s7, 16, %s394_s10, [#allocation15]  }
  0xba   : > { %s2192_s21 = sadd.s32 4294967294, %s1636_s18   ;;  %s48_s9 = sadd.s32 1, %s1632_s17 }
  0xbb   : > { %p50_p8 = scmp.ge.s32.totalorder %s48_s9, 2  ;;  %s57_s23 = sadd.s32 1, %s1624_s15 }
  0xbc   : > { %p64_p1 = scmp.ne.s32.totalorder %s1624_s15, %s1620_s14  ;;  %p65_p3 = scmp.eq.s32.totalorder %s1636_s18, 0 }
  0xbd   : > { %s2246_s9 = smov (%p50_p8, %s48_s9), 0  ;;  %p70_p12 = scmp.ne.s32.totalorder %s1620_s14, %s1616_s13 }
  0xbe   : > { %p1905_p11 = por %p65_p3, %p64_p1  ;;  %s52_s10 = ssub.s32 %s1632_s17, %s2246_s9 }
  0xbf   : > { %p250_p6 = scmp.eq.s32.totalorder %s1739_s19, 1  ;;  %p55_p13 = scmp.eq.s32.totalorder %s52_s10, 0 }
  0xc0   : > { %p2215_p0 = scmp.eq.s32.totalorder %s1739_s19, 0  ;;  %p256_p7 = scmp.eq.s32.totalorder %s2192_s21, 1 }
  0xc1   : > { %p1920_p4 = por %p250_p6, %p64_p1  ;;  %p1174_p5 = scmp.lt.s32.totalorder %s1636_s18, 2 }
  0xc2   : > { %p1916_p2 = por %p2215_p0, %p70_p12  ;;  %p1929_p9 = por %p256_p7, %p70_p12 }
  0xc3   : > { %s2217_s24 = scalar_select %p1920_p4, 1, 0 }
  0xc4   : > { %s2216_s11 = scalar_select %p1916_p2, 1, 0 }
  0xc5   : > { %s1927_s26 = scalar_select %p55_p13, %s1624_s15, %s57_s23  }
  0xc6   : > { %s2218_s28 = scalar_select %p1929_p9, 1, 0 }
  0xc7   : > { %s404_s22 = sand.u32 1, %s1624_s15   ;;  %s1030_s25 = sshll.u32 %s1632_s17, 6 }
  0xc8   : > { %s1936_s8 = sshll.u32 %s404_s22, 2  ;;  %s2219_s0 = sld [smem:[#allocation29_spill]] }
  0xc9   : > { %s408_s16 = scalar_lea.vmem [#allocation2], %s1936_s8  ;;  %p1946_p10 = pnand %p1174_p5, %p1905_p11 }
  0xca   : > { %s416_s23 = sshll.u32 %s408_s16, 4  ;;  %s1955_s27 = scalar_lea.hbm %s2176_s1, %s1030_s25  ;;  %s1950_s23 = int_to_ptr.vmem [resolvable:$true] %s416_s23 }
  0xcb   : > { %s405_s2 = scalar_lea.sflag [#allocation3], %s404_s22  ;;  %p1416_p1 = pneg %p1946_p10 }
  0xce   : > { %s1941_s30 = scalar_lea.hbm %s2219_s0, %s1030_s25  ;;  %s1419_s4 = scalar_lea.hbm %s2219_s0, 128 }
  0xcf   : > { %s1414_s3 = scalar_lea.hbm %s1941_s30, 64  ;;  %p1420_p12 = scmp.lt.u32.totalorder %s1941_s30, %s2219_s0 }
  0xd0   : > { %p1415_p8 = scmp.ne.s32.totalorder %s1941_s30, %s1414_s3  ;;  %p1421_p6 = scmp.lt.u32.totalorder %s1419_s4, %s1414_s3 }
  0xd1   : > { %p1423_p0 = scmp.lt.u32.totalorder %s1414_s3, %s1941_s30 }
  0xd2   : > { %p1417_p3 = pnand %p1416_p1, %p1415_p8  ;;  %p1422_p13 = por %p1421_p6, %p1420_p12 }
  0xd4   : > { %p1418_p11 = pneg %p1417_p3  ;;  %p1424_p7 = por %p1423_p0, %p1422_p13 }
  0xd6   : > { %p1425_p5 = pnand %p1424_p7, %p1418_p11 }
  0xd8   : > { %1428 = shalt.err (!%p1425_p5)
}
  0xd9   : > { %s1429_s21 = scalar_lea.vmem %s1950_s23, 64  ;;  %s1646_s22 = smov [#allocation2]  }
  0xda   : > { %p1430_p8 = scmp.ne.s32.totalorder %s1950_s23, %s1429_s21  ;;  %s1434_s25 = sshll.u32 %s1646_s22, 4  ;;  %s1435_s25 = int_to_ptr.vmem [resolvable:$false] %s1434_s25 }
  0xdb   : > { %s1436_s5 = scalar_lea.vmem %s1435_s25, 128  ;;  %p1437_p4 = scmp.lt.s32.totalorder %s1950_s23, %s1435_s25 }
  0xdc   : > { %p1432_p3 = pnand %p1430_p8, %p1416_p1  ;;  %p1438_p12 = scmp.lt.s32.totalorder %s1436_s5, %s1429_s21 }
  0xde   : > { %p1433_p9 = pneg %p1432_p3  ;;  %p1439_p6 = por %p1438_p12, %p1437_p4 }
  0xe0   : > { %p1440_p13 = pnand %p1439_p6, %p1433_p9 }
  0xe2   : > { %1443 = shalt.err (!%p1440_p13)
}
  0xe3   : > { %1154 = dma.hbm_to_vmem [thread:$0]  (!%p1946_p10), %s1941_s30, 64, %s1950_s23, %s405_s2  }
  0xe4   : > { %s423_s3 = sand.u32 1, %s1636_s18   ;;  %s427_s4 = scalar_lea.vmem [#allocation5], %s1936_s8 }
  0xe5   : > { %s435_s6 = sshll.u32 %s427_s4, 4  ;;  %s424_s12 = scalar_lea.sflag [#allocation6], %s423_s3  ;;  %s436_s6 = int_to_ptr.vmem [resolvable:$true] %s435_s6 }
  0xe6   : > { %s1444_s29 = scalar_lea.hbm %s1955_s27, 64  ;;  %s1449_s22 = scalar_lea.hbm %s2176_s1, 128 }
  0xe7   : > { %p1445_p4 = scmp.ne.s32.totalorder %s1955_s27, %s1444_s29  ;;  %p1450_p0 = scmp.lt.u32.totalorder %s1955_s27, %s2176_s1 }
  0xe8   : > { %p1451_p7 = scmp.lt.u32.totalorder %s1449_s22, %s1444_s29  ;;  %p1453_p8 = scmp.lt.u32.totalorder %s1444_s29, %s1955_s27 }
  0xe9   : > { %p1447_p9 = pnand %p1445_p4, %p1416_p1 }
  0xea   : > { %p1452_p5 = por %p1451_p7, %p1450_p0 }
  0xeb   : > { %p1448_p11 = pneg %p1447_p9 }
  0xec   : > { %p1454_p3 = por %p1453_p8, %p1452_p5 }
  0xee   : > { %p1455_p12 = pnand %p1454_p3, %p1448_p11 }
  0xf0   : > { %1458 = shalt.err (!%p1455_p12)
}
  0xf1   : > { %s1459_s2 = scalar_lea.vmem %s436_s6, 64  ;;  %s1647_s8 = smov [#allocation5]  }
  0xf2   : > { %p1460_p6 = scmp.ne.s32.totalorder %s436_s6, %s1459_s2  ;;  %s1464_s30 = sshll.u32 %s1647_s8, 4  ;;  %s1465_s30 = int_to_ptr.vmem [resolvable:$false] %s1464_s30 }
  0xf3   : > { %s1466_s23 = scalar_lea.vmem %s1465_s30, 128  ;;  %p1467_p9 = scmp.lt.s32.totalorder %s436_s6, %s1465_s30 }
  0xf4   : > { %p1462_p13 = pnand %p1460_p6, %p1416_p1  ;;  %p1468_p2 = scmp.lt.s32.totalorder %s1466_s23, %s1459_s2 }
  0xf6   : > { %p1463_p4 = pneg %p1462_p13  ;;  %p1469_p0 = por %p1468_p2, %p1467_p9 }
  0xf8   : > { %p1470_p7 = pnand %p1469_p0, %p1463_p4 }
  0xfa   : > { %1473 = shalt.err (!%p1470_p7)
}
  0xfb   : > { %1157 = dma.hbm_to_vmem [thread:$0]  (!%p1946_p10), %s1955_s27, 64, %s436_s6, %s424_s12  }
  0xfc   : > { %p2221_p11 = scmp.ne.s32.totalorder %s2205_s20, 0 }
  0xfd   : > { %s2006_s3 = sand.u32 (!%p2221_p11), 1, %s1620_s14   ;;  %p2222_p2 = scmp.ne.s32.totalorder (!%p2221_p11), %s2216_s11, 0 }
  0xfe   : > { %444 = sbr.rel (%p2221_p11) target bundleno = 567 (0x237), region = 52  ;;  %s2009_s4 = sshll.u32 (!%p2221_p11), %s2006_s3, 2 }
  0xff   : > { %s447_s29 = scalar_lea.sflag (!%p2221_p11), [#allocation3], %s2006_s3  ;;  %s450_s16 = scalar_lea.vmem (!%p2221_p11), [#allocation2], %s2009_s4 }
 0x105   : > { %1583 = dma.done.wait (%p2222_p2), %s447_s29, 64  }
 0x106   : > { %1585 = vsyncadd (%p2222_p2), %s447_s29, 4294967232  ;;  %s455_s20 = sand.u32 1, %s1739_s19   ;;  %s459_s27 = scalar_lea.vmem [#allocation5], %s2009_s4 }
 0x107   : > { %s456_s10 = scalar_lea.sflag [#allocation6], %s455_s20 }
 0x108   : > { %1587 = dma.done.wait (%p2222_p2), %s456_s10, 64  }
 0x109   : > { %1589 = vsyncadd (%p2222_p2), %s456_s10, 4294967232  ;;  %p2223_p10 = scmp.eq.s32.totalorder %s1739_s19, 0 }
 0x10b   : > { %1591 = dma.done.wait (%p2223_p10), [#allocation6], 256   ;;  %p2224_p1 = pmov %p2223_p10 }
 0x10d   : > { %1593 = vsyncadd (%p2224_p1), [#allocation6], 4294967040  ;;  %p2225_p5 = pmov %p2224_p1 }
 0x10e   : > { %p2226_p8 = pmov %p2224_p1 }
 0x10f   : > { %1595 = dma.done.wait (%p2225_p5), [#allocation9], 512  }
 0x110   : > { %1597 = vsyncadd (%p2226_p8), [#allocation9], 4294966784  ;;  %p2227_p3 = pmov %p2224_p1 }
 0x111   : > { %p2228_p12 = pmov %p2224_p1 }
 0x112   : > { %1599 = dma.done.wait (%p2227_p3), [#allocation12], 32  }
 0x113   : > { %1601 = vsyncadd (%p2228_p12), [#allocation12], 4294967264  ;;  %p2229_p6 = pmov %p2224_p1 }
 0x114   : > { %p2230_p13 = pmov %p2224_p1 }
 0x115   : > { %1603 = dma.done.wait (%p2229_p6), [#allocation15], 16  }
 0x116   : > { %1605 = vsyncadd (%p2230_p13), [#allocation15], 4294967280  ;;  %v1648_v0 = vmov 0.0   ;;  %vm1649_vm0 = vmmov 0   ;;  %v1240_v1 = vld [vmem:[#allocation7] sm:$0xff]   ;;  %v1241_v2 = vld [vmem:[#allocation7 + $0x8] sm:$0xff]  }
 0x117   : > { %1074 = vmatprep.subr.bf16.mxu0 %v1648_v0  ;;  %1082 = vmatprep.subr.bf16.mxu1 %v1648_v0  ;;  %v1242_v3 = vld [vmem:[#allocation8] sm:$0xff]   ;;  %v1244_v4 = vld [vmem:[#allocation8 + $0x8] sm:$0xff]   ;;  %vm561_vm1 = vcmask 261120   ;;  %v1243_v6 = vld [vmem:[#allocation10] sm:$0xff]   ;;  %s2231_s11 = sld [smem:[#allocation28_spill]]  ;;  %s527_s12 = scalar_lea.vmem [#allocation17], %s2009_s4 }
 0x118   : > { %1078 = vmatprep.mubr.msk.bf16.mxu0 %vm1649_vm0, %v1648_v0  ;;  %1086 = vmatprep.mubr.msk.bf16.mxu1 %vm1649_vm0, %v1648_v0  ;;  %v537_v5 = vld [vmem:[%s459_s27] sm:$0xf]  ;;  %v536_v7 = vld [vmem:[%s450_s16] sm:$0xf]  ;;  %v1245_v8 = vld [vmem:[#allocation10 + $0x8] sm:$0xff]   ;;  %s781_s21 = sshll.u32 %s527_s12, 4  ;;  %s2057_s21 = int_to_ptr.vmem [resolvable:$true] %s781_s21 }
 0x119   : > { %1075 = vmatpush3.bf16.msra.mxu0 %v1240_v1  ;;  %1083 = vmatpush3.bf16.msra.mxu1 %v1242_v3  ;;  %v1045_v9 = vld [vmem:[#allocation11] ss:$0 sm:$0xff]  ;;  %v1049_v11 = vld [vmem:[#allocation13] ss:$0 sm:$0xff]  ;;  %s520_s22 = scalar_lea.vmem [#allocation16], %s2009_s4  ;;  %vm736_vm2 = vcmask 257024  }
 0x11a   : > { %1076 = vmatprep.subr.bf16.mxu0 %v1648_v0  ;;  %1084 = vmatprep.subr.bf16.mxu1 %v1648_v0  ;;  %s767_s25 = sshll.u32 %s520_s22, 4  ;;  %s2232_s8 = sld [smem:[#allocation36_spill]]  ;;  %v1053_v24 = vld [vmem:[#allocation14] ss:$0 sm:$0xff]  ;;  %s2065_s25 = int_to_ptr.vmem [resolvable:$true] %s767_s25 }
 0x11b   : > { %s2233_s16 = sld [smem:[#allocation35_spill]]  ;;  %s2076_s2 = scalar_lea.sflag [#allocation18], %s455_s20 }
 0x11c   : > { %s1474_s0 = scalar_lea.vmem %s2057_s21, 64  ;;  %p2235_p9 = scmp.ne.s32.totalorder %s2217_s24, 0 }
 0x11d   : > { %1077 = vmatpush3.bf16.msra.mxu0 %v1241_v2  ;;  %1085 = vmatpush3.bf16.msra.mxu1 %v1244_v4  ;;  %s2047_s6 = sshll.u32 %s2231_s11, 6  ;;  %s534_s11 = scalar_lea.vmem [#allocation19], %s2009_s4 }
 0x11e   : > { %1090 = vmatprep.subr.bf16.mxu0 %v1648_v0  ;;  %s2072_s5 = sshll.u32 %s534_s11, 4  ;;  %p1475_p4 = scmp.ne.s32.totalorder %s2057_s21, %s1474_s0  ;;  %s796_s5 = int_to_ptr.vmem [resolvable:$true] %s2072_s5 }
 0x11f   : > { %s1650_s23 = smov [#allocation17]  }
 0x120   : > { %1079 = vmatmul.mubr.msk.bf16.vlgmr.msra.gmra.mrb[0].mxu0 %vm561_vm1, %v537_v5  ;;  %1087 = vmatmul.mubr.msk.bf16.vlgmr.msra.gmra.mrb[0].mxu1 %vm561_vm1, %v536_v7  ;;  %s2055_s30 = scalar_lea.hbm %s2232_s8, %s2047_s6  ;;  %p1476_p0 = pnand %p1475_p4, %p2235_p9 }
 0x121   : > { %1091 = vmatpush3.bf16.msra.mxu0 %v1243_v6  ;;  %1094 = vmatprep.mubr.msk.bf16.mxu0 %vm1649_vm0, %v1648_v0  ;;  %s2234_s10 = smov %s2233_s16  ;;  %s2063_s27 = scalar_lea.hbm %s2233_s16, %s2047_s6 }
 0x122   : > { %1092 = vmatprep.subr.bf16.mxu0 %v1648_v0  ;;  %p1477_p7 = pneg %p1476_p0  ;;  %s1478_s29 = sshll.u32 %s1650_s23, 4  ;;  %s1479_s29 = int_to_ptr.vmem [resolvable:$false] %s1478_s29 }
 0x123   : > { %s1480_s16 = scalar_lea.vmem %s1479_s29, 128  ;;  %p1481_p11 = scmp.lt.s32.totalorder %s2057_s21, %s1479_s29 }
 0x124   : > { %p1482_p2 = scmp.lt.s32.totalorder %s1480_s16, %s1474_s0 }
 0x125   : > { %1093 = vmatpush3.bf16.msra.mxu0 %v1245_v8 }
 0x126   : > { %p1483_p10 = por %p1482_p2, %p1481_p11 }
 0x128   : > { %1095 = vmatmul.mubr.msk.bf16.vlgmr.msra.gmra.mrb[4].mxu0 %vm561_vm1, %v536_v7  ;;  %p1484_p1 = pnand %p1483_p10, %p1477_p7 }
 0x1f3   : > { %v599_v10 = vpop.f32.mrb[0].mxu0  ;;  %v666_v15 = vpop.f32.mrb[0].mxu1 }
 0x1f4   : > { %v600_v12 = vadd.f32 %v1045_v9, %v599_v10  ;;  %v1080_v13 = vpop.f32.mrb[1].mxu0  ;;  %v667_v18 = vadd.f32 %v1049_v11, %v666_v15  ;;  %v1088_v19 = vpop.f32.mrb[1].mxu1 }
 0x1f5   : > { %v602_v14 = vpop.f32.mrb[2].mxu0  ;;  %v669_v20 = vpop.f32.mrb[2].mxu1 }
 0x1f6   : > { %v605_v16 = vmul.f32 0.35355338, %v600_v12  ;;  %v1081_v17 = vpop.f32.mrb[3].mxu0  ;;  %v738_v22 = vpack.c.bf16 %v667_v18, %v667_v18  ;;  %v1089_v23 = vpop.f32.mrb[3].mxu1 }
 0x1f8   : > { %v735_v21 = vpack.c.bf16 %v605_v16, %v605_v16  ;;  %739 = vst.msk [vmem:[%s527_s12] sm:$0xf] %vm736_vm2, %v738_v22 }
 0x1fa   : > { %737 = vst.msk [vmem:[%s520_s22] sm:$0xf] %vm736_vm2, %v735_v21 }
 0x1fb   : > { %v729_v25 = vpop.f32.mrb[4].mxu0 }
 0x1fc   : > { %1487 = shalt.err (!%p1484_p1)
}
 0x1fd   : > { %s1488_s19 = scalar_lea.hbm %s2055_s30, 64  ;;  %s1492_s22 = scalar_lea.hbm %s2232_s8, 128 }
 0x1fe   : > { %p1489_p5 = scmp.ne.s32.totalorder %s2055_s30, %s1488_s19  ;;  %p1493_p12 = scmp.lt.u32.totalorder %s2055_s30, %s2232_s8 }
 0x1ff   : > { %p1494_p6 = scmp.lt.u32.totalorder %s1492_s22, %s1488_s19  ;;  %p1496_p4 = scmp.lt.u32.totalorder %s1488_s19, %s2055_s30 }
 0x200   : > { %p1490_p8 = pnand %p1489_p5, %p2235_p9 }
 0x201   : > { %p1495_p13 = por %p1494_p6, %p1493_p12 }
 0x202   : > { %p1491_p3 = pneg %p1490_p8 }
 0x203   : > { %p1497_p0 = por %p1496_p4, %p1495_p13 }
 0x205   : > { %p1498_p7 = pnand %p1497_p0, %p1491_p3 }
 0x207   : > { %1501 = shalt.err (!%p1498_p7)
}
 0x208   : > { %1127 = dma.vmem_to_hbm [thread:$0]  (%p2235_p9), %s2057_s21, 64, %s2055_s30, %s2076_s2   ;;  %v730_v26 = vadd.f32 %v1053_v24, %v729_v25  ;;  %v1096_v27 = vpop.f32.mrb[5].mxu0 }
 0x209   : > { %s743_s0 = scalar_lea.sflag [#allocation4], %s2006_s3  ;;  %s1502_s16 = scalar_lea.vmem %s2065_s25, 64 }
 0x20a   : > { %p1503_p11 = scmp.ne.s32.totalorder %s2065_s25, %s1502_s16  ;;  %s1651_s19 = smov [#allocation16]  }
 0x20b   : > { %s1506_s20 = sshll.u32 %s1651_s19, 4  ;;  %s1507_s20 = int_to_ptr.vmem [resolvable:$false] %s1506_s20 }
 0x20c   : > { %p1504_p2 = pnand %p1503_p11, %p2235_p9  ;;  %s1508_s12 = scalar_lea.vmem %s1507_s20, 128 }
 0x20d   : > { %p1509_p1 = scmp.lt.s32.totalorder %s2065_s25, %s1507_s20  ;;  %p1510_p5 = scmp.lt.s32.totalorder %s1508_s12, %s1502_s16 }
 0x20e   : > { %p1505_p10 = pneg %p1504_p2 }
 0x20f   : > { %p1511_p8 = por %p1510_p5, %p1509_p1 }
 0x211   : > { %p1512_p3 = pnand %p1511_p8, %p1505_p10 }
 0x213   : > { %1515 = shalt.err (!%p1512_p3)
}
 0x214   : > { %s1516_s3 = scalar_lea.hbm %s2063_s27, 64  ;;  %s1520_s22 = scalar_lea.hbm %s2234_s10, 128 }
 0x215   : > { %p1517_p12 = scmp.ne.s32.totalorder %s2063_s27, %s1516_s3  ;;  %p1521_p4 = scmp.lt.u32.totalorder %s2063_s27, %s2234_s10 }
 0x216   : > { %p1522_p0 = scmp.lt.u32.totalorder %s1520_s22, %s1516_s3  ;;  %p1524_p11 = scmp.lt.u32.totalorder %s1516_s3, %s2063_s27 }
 0x217   : > { %p1518_p6 = pnand %p1517_p12, %p2235_p9 }
 0x218   : > { %p1523_p7 = por %p1522_p0, %p1521_p4 }
 0x219   : > { %p1519_p13 = pneg %p1518_p6 }
 0x21a   : > { %p1525_p2 = por %p1524_p11, %p1523_p7 }
 0x21c   : > { %p1526_p10 = pnand %p1525_p2, %p1519_p13 }
 0x21e   : > { %1529 = shalt.err (!%p1526_p10)
}
 0x21f   : > { %1126 = dma.vmem_to_hbm [thread:$0]  (%p2235_p9), %s2065_s25, 64, %s2063_s27, %s743_s0   ;;  %v732_v28 = vpop.f32.mrb[6].mxu0  ;;  %v740_v29 = vpack.c.bf16 %v730_v26, %v730_v26 }
 0x220   : > { %v1097_v30 = vpop.f32.mrb[7].mxu0  ;;  %s2236_s20 = sld [smem:[#allocation37_spill]]  ;;  %s1530_s3 = scalar_lea.vmem %s796_s5, 64 }
 0x221   : > { %741 = vst.msk [vmem:[%s534_s11] sm:$0xf] %vm736_vm2, %v740_v29  ;;  %p1531_p1 = scmp.ne.s32.totalorder %s796_s5, %s1530_s3  ;;  %s1652_s21 = smov [#allocation19]  }
 0x222   : > { %s1534_s30 = sshll.u32 %s1652_s21, 4  ;;  %s1535_s30 = int_to_ptr.vmem [resolvable:$false] %s1534_s30 }
 0x223   : > { %p1532_p5 = pnand %p1531_p1, %p2235_p9  ;;  %s1536_s25 = scalar_lea.vmem %s1535_s30, 128 }
 0x224   : > { %p1537_p3 = scmp.lt.s32.totalorder %s796_s5, %s1535_s30  ;;  %p1538_p12 = scmp.lt.s32.totalorder %s1536_s25, %s1530_s3 }
 0x225   : > { %p1533_p8 = pneg %p1532_p5 }
 0x226   : > { %s2126_s12 = scalar_lea.hbm %s2236_s20, %s2047_s6  ;;  %p1539_p6 = por %p1538_p12, %p1537_p3 }
 0x228   : > { %p1540_p13 = pnand %p1539_p6, %p1533_p8 }
 0x22a   : > { %1543 = shalt.err (!%p1540_p13)
}
 0x22b   : > { %s1544_s4 = scalar_lea.hbm %s2126_s12, 64  ;;  %s1548_s11 = scalar_lea.hbm %s2236_s20, 128 }
 0x22c   : > { %p1545_p4 = scmp.ne.s32.totalorder %s2126_s12, %s1544_s4  ;;  %p1549_p11 = scmp.lt.u32.totalorder %s2126_s12, %s2236_s20 }
 0x22d   : > { %p1550_p2 = scmp.lt.u32.totalorder %s1548_s11, %s1544_s4  ;;  %p1552_p1 = scmp.lt.u32.totalorder %s1544_s4, %s2126_s12 }
 0x22e   : > { %p1546_p0 = pnand %p1545_p4, %p2235_p9 }
 0x22f   : > { %p1551_p10 = por %p1550_p2, %p1549_p11 }
 0x230   : > { %p1547_p7 = pneg %p1546_p0 }
 0x231   : > { %p1553_p5 = por %p1552_p1, %p1551_p10 }
 0x233   : > { %p1554_p8 = pnand %p1553_p5, %p1547_p7 }
 0x235   : > { %1557 = shalt.err (!%p1554_p8)
}
 0x236   : > { %1128 = dma.vmem_to_hbm [thread:$0]  (%p2235_p9), %s796_s5, 64, %s2126_s12, %s2076_s2  }
 0x237 PF: > { %s807_s23 = sand.u32 1, %s1616_s13   ;;  %p2237_p3 = scmp.ne.s32.totalorder %s2218_s28, 0 }
 0x238   : > { %p2238_p12 = scmp.ge.s32.totalorder %s1636_s18, 2  ;;  %s808_s29 = scalar_lea.sflag [#allocation4], %s807_s23 }
 0x23a   : > { %p1159_p6 = pnand %p2238_p12, %p2237_p3 }
 0x23c   : > { %1607 = dma.done.wait (!%p1159_p6), %s808_s29, 64  }
 0x23d   : > { %1609 = vsyncadd (!%p1159_p6), %s808_s29, 4294967232  ;;  %s2239_s16 = sadd.s32 4294967294, %s1636_s18  }
 0x23e   : > { %s816_s19 = sand.u32 1, %s2239_s16  }
 0x23f   : > { %s817_s3 = scalar_lea.sflag [#allocation18], %s816_s19 }
 0x240   : > { %1611 = dma.done.wait (!%p1159_p6), %s817_s3, 128  }
 0x241   : > { %1613 = vsyncadd (!%p1159_p6), %s817_s3, 4294967168  ;;  %s36_s18 = sadd.s32 1, %s1636_s18   ;;  %s2240_s13 = smov %s1620_s14 }
 0x242   : > { %p33_p9 = scmp.ge.s32.totalorder %s36_s18, 4   ;;  %s2241_s14 = smov %s1624_s15 }
 0x243   : > { %s2242_s15 = smov %s1927_s26  ;;  %s2243_s16 = smov %s1632_s17 }
 0x244   : > { %s2244_s17 = smov %s2246_s9  ;;  %35 = sbr.rel (!%p33_p9) target bundleno = 23 (0x17), region = 166 }
 0x24b   :  { %831 = vsyncpa [#allocation3], 1 }
 0x24c   :  { %833 = vsyncpa [#allocation3 + $0x1], 1 }
 0x24d   :  { %834 = vsyncpa [#allocation6], 1 }
 0x24e   :  { %836 = vsyncpa [#allocation6 + $0x1], 1 }
 0x24f   :  { %837 = vsyncpa [#allocation9], 1 }
 0x250   :  { %838 = vsyncpa [#allocation12], 1 }
 0x251   :  { %839 = vsyncpa [#allocation15], 1 }
 0x252   :  { %840 = vsyncpa [#allocation4], 1 }
 0x253   :  { %842 = vsyncpa [#allocation4 + $0x1], 1 }
 0x254   :  { %843 = vsyncpa [#allocation18], 1 }
 0x255   :  { %845 = vsyncpa [#allocation18 + $0x1], 1 }

</bundles_post_ra>
